<compile_context>
chip_gen: v7x
topology: tpu7x:2x2x1
jax: 0.10.0
libtpu: 0.0.40
codegen_flags: <defaults>
</compile_context>

<pallas_src>
import jax
import jax.numpy as jnp
from jax.experimental import pallas as pl
from jax.experimental.pallas import tpu as pltpu


# ---------------------------------------------------------------------------
# Kernel
# ---------------------------------------------------------------------------
def _make_kernel(hw_total: int, tk: int):
    """Row-sum kernel specialized on the static spatial size / tile size."""
    ragged_hw = (hw_total % tk) != 0  # static: mask code only emitted if needed

    def kernel(x_ref, inv_ref, o_ref, acc_ref):
        # x_ref:   (TM, TK)  tile of the flattened (rows, HW) input (native dtype)
        # inv_ref: (TM, 1)   f32 precomputed 1 / (area + 1) per row
        # o_ref:   (TM, 1)   f32 output (masked average per row)
        # acc_ref: (TM, 128) f32 lane-dense running accumulator (VMEM scratch)
        k = pl.program_id(1)

        @pl.when(k == 0)
        def _init():
            acc_ref[...] = jnp.zeros_like(acc_ref)

        x = x_ref[...].astype(jnp.float32)                     # (TM, TK)

        if ragged_hw:
            # Zero the out-of-bounds columns of the (padded) last HW block.
            # For non-last blocks valid >= TK so the select is a no-op.
            valid = hw_total - k * tk
            col = jax.lax.broadcasted_iota(jnp.int32, x.shape, 1)
            x = jnp.where(col < valid, x, 0.0)

        # Lane-dense partial reduction: fold TK into 128-wide chunks with VPU
        # elementwise adds (128-aligned static slices -> no boundary copies).
        partial = x[:, 0:128]
        for j in range(1, tk // 128):
            partial = partial + x[:, j * 128:(j + 1) * 128]
        acc_ref[...] += partial

        @pl.when(k == pl.num_programs(1) - 1)
        def _finalize():
            # Single cross-lane (XLU) reduce per row block, then scale by the
            # precomputed exact-f32 reciprocal area.
            row_sum = jnp.sum(acc_ref[...], axis=-1, keepdims=True)  # (TM, 1)
            o_ref[...] = row_sum * inv_ref[...]

    return kernel


# ---------------------------------------------------------------------------
# Wrapper
# ---------------------------------------------------------------------------
def _round_up(a: int, b: int) -> int:
    return ((a + b - 1) // b) * b


def _nearest_indices(in_size: int, out_size: int) -> jnp.ndarray:
    # PyTorch F.interpolate(mode='nearest'): src = floor(dst * in / out)
    return ((jnp.arange(out_size) * in_size) // out_size).astype(jnp.int32)


def masked_avg_pool(x: jnp.ndarray, mask: jnp.ndarray) -> jnp.ndarray:
    """x: (N, C, H, W); mask: (N, 1, Hm, Wm) -> (N, C, 1, 1) float32."""
    N, C, H, W = x.shape
    Hm, Wm = mask.shape[2], mask.shape[3]
    NC, HW = N * C, H * W

    # --- glue: per-image area from the ORIGINAL mask via nearest-resize
    #     multiplicities (the (N,1,H,W) resized mask is never materialized) ---
    h_idx = _nearest_indices(Hm, H)
    w_idx = _nearest_indices(Wm, W)
    h_cnt = jnp.zeros((Hm,), jnp.float32).at[h_idx].add(1.0)
    w_cnt = jnp.zeros((Wm,), jnp.float32).at[w_idx].add(1.0)
    area = jnp.einsum("nhw,h,w->n",
                      mask[:, 0].astype(jnp.float32), h_cnt, w_cnt) + 1.0
    inv_rows = jnp.repeat((1.0 / area).astype(jnp.float32), C).reshape(NC, 1)

    # --- flatten (free view, native dtype: no wrapper-side upcast/copy) ---
    x_flat = x.reshape(NC, HW)

    # --- tiling: block shapes are (8,128)-aligned; the arrays need not be.
    #     Ragged tails are handled by Pallas boundary blocks + in-kernel
    #     column masking, so x is never padded/copied in HBM.            ---
    NC_pad = _round_up(NC, 8)
    HW_pad = _round_up(HW, 128)
    TM = min(256, NC_pad)
    if 16 <= NC_pad <= 256:
        TM = _round_up(NC_pad // 2, 8)   # >=2 row blocks -> megacore-shardable
    TK = min(2048, HW_pad)

    grid = (pl.cdiv(NC, TM), pl.cdiv(HW, TK))   # rows (parallel), HW reduce (last)

    out = pl.pallas_call(
        _make_kernel(HW, TK),
        out_shape=jax.ShapeDtypeStruct((NC, 1), jnp.float32),
        grid=grid,
        in_specs=[
            pl.BlockSpec((TM, TK), lambda i, k: (i, k)),
            pl.BlockSpec((TM, 1), lambda i, k: (i, 0)),
        ],
        out_specs=pl.BlockSpec((TM, 1), lambda i, k: (i, 0)),
        scratch_shapes=[pltpu.VMEM((TM, 128), jnp.float32)],
        compiler_params=pltpu.CompilerParams(
            dimension_semantics=("parallel", "arbitrary"),
        ),
    )(x_flat, inv_rows)

    return out.reshape(N, C, 1, 1)


# ---------------------------------------------------------------------------
# Pure-JAX reference (matches the PyTorch module)
# ---------------------------------------------------------------------------
def _reference(x, mask):
    N, C, H, W = x.shape
    Hm, Wm = mask.shape[2], mask.shape[3]
    h_idx = _nearest_indices(Hm, H)
    w_idx = _nearest_indices(Wm, W)
    mask_rs = mask[:, :, h_idx[:, None], w_idx[None, :]]        # (N, 1, H, W)
    xs = x.astype(jnp.float32).reshape(N, C, -1).sum(-1)
    area = mask_rs.astype(jnp.float32).reshape(N, 1, -1).sum(-1) + 1.0
    return (xs / area)[:, :, None, None]


if __name__ == "__main__":
    key = jax.random.PRNGKey(0)

    def _check(N, C, H, W, Hm, Wm, k):
        kx, km = jax.random.split(k)
        x = jax.random.normal(kx, (N, C, H, W), dtype=jnp.float32)
        mask = (jax.random.uniform(km, (N, 1, Hm, Wm)) > 0.5).astype(jnp.float32)
        out = jax.block_until_ready(masked_avg_pool(x, mask))
        ref = _reference(x, mask)
        assert out.shape == (N, C, 1, 1)
        assert jnp.allclose(out, ref, atol=1e-5, rtol=1e-5), (
            f"mismatch for x{(N, C, H, W)} mask{(Hm, Wm)}")

    k0, k1, k2 = jax.random.split(key, 3)
    # Primary small test (aligned shapes, mask at a different resolution).
    _check(2, 4, 16, 16, 8, 8, k0)
    # Ragged rows (N*C=6) + ragged spatial size (H*W=63) -> in-kernel masking.
    _check(2, 3, 7, 9, 5, 4, k1)
    # Multi-block reduction (H*W=2304 > TK) with ragged last block + 2 row blocks.
    _check(2, 8, 48, 48, 12, 12, k2)

    print("KERNEL_OK")
</pallas_src>

<mosaic_0001>
module attributes {stable_mosaic.version = 11 : i64} {
  func.func @kernel(%arg0: i32, %arg1: i32, %arg2: memref<8x256xf32, #tpu.memory_space<vmem>>, %arg3: memref<8x1xf32, #tpu.memory_space<vmem>>, %arg4: memref<8x1xf32, #tpu.memory_space<vmem>>, %arg5: memref<8x128xf32, #tpu.memory_space<vmem>>) attributes {dimension_semantics = [#tpu.dimension_semantics<parallel>, #tpu.dimension_semantics<arbitrary>], iteration_bounds = array<i64: 1, 1>, scalar_prefetch = 0 : i64, scratch_operands = 1 : i64, tpu.core_type = #tpu.core_type<tc>, window_params = [{transform_indices = @transform_0, window_bounds = array<i64: 8, 256>}, {transform_indices = @transform_1, window_bounds = array<i64: 8, 1>}, {transform_indices = @transform_2, window_bounds = array<i64: 8, 1>}]} {
    %c0_i32 = arith.constant 0 : i32
    %0 = arith.cmpi eq, %arg1, %c0_i32 : i32
    %1 = arith.extui %0 : i1 to i32
    %c0_i32_0 = arith.constant 0 : i32
    %2 = arith.cmpi ne, %1, %c0_i32_0 : i32
    scf.if %2 {
      %cst = arith.constant 0.000000e+00 : f32
      %13 = vector.broadcast %cst : f32 to vector<8x128xf32>
      %c0_8 = arith.constant 0 : index
      %c0_9 = arith.constant 0 : index
      %14 = vector.load %arg5[%c0_8, %c0_9] : memref<8x128xf32, #tpu.memory_space<vmem>>, vector<8x128xf32>
      tpu.vector_store %arg5[%c0_8, %c0_9], %13 {strides = array<i32>} : memref<8x128xf32, #tpu.memory_space<vmem>>, vector<8x128xf32>,
    } else {
    }
    %c0 = arith.constant 0 : index
    %c0_1 = arith.constant 0 : index
    %3 = vector.load %arg2[%c0, %c0_1] : memref<8x256xf32, #tpu.memory_space<vmem>>, vector<8x256xf32>
    %4 = vector.extract_strided_slice %3 {offsets = [0, 0], sizes = [8, 128], strides = [1, 1]} : vector<8x256xf32> to vector<8x128xf32>
    %5 = vector.extract_strided_slice %3 {offsets = [0, 128], sizes = [8, 128], strides = [1, 1]} : vector<8x256xf32> to vector<8x128xf32>
    %6 = arith.addf %4, %5 : vector<8x128xf32>
    %c0_2 = arith.constant 0 : index
    %c0_3 = arith.constant 0 : index
    %7 = vector.load %arg5[%c0_2, %c0_3] : memref<8x128xf32, #tpu.memory_space<vmem>>, vector<8x128xf32>
    %8 = arith.addf %7, %6 : vector<8x128xf32>
    %c0_4 = arith.constant 0 : index
    %c0_5 = arith.constant 0 : index
    %9 = vector.load %arg5[%c0_4, %c0_5] : memref<8x128xf32, #tpu.memory_space<vmem>>, vector<8x128xf32>
    tpu.vector_store %arg5[%c0_4, %c0_5], %8 {strides = array<i32>} : memref<8x128xf32, #tpu.memory_space<vmem>>, vector<8x128xf32>,
    %c0_i32_6 = arith.constant 0 : i32
    %10 = arith.cmpi eq, %arg1, %c0_i32_6 : i32
    %11 = arith.extui %10 : i1 to i32
    %c0_i32_7 = arith.constant 0 : i32
    %12 = arith.cmpi ne, %11, %c0_i32_7 : i32
    scf.if %12 {
      %c0_8 = arith.constant 0 : index
      %c0_9 = arith.constant 0 : index
      %13 = vector.load %arg5[%c0_8, %c0_9] : memref<8x128xf32, #tpu.memory_space<vmem>>, vector<8x128xf32>
      %cst = arith.constant dense<0.000000e+00> : vector<8xf32>
      %14 = vector.multi_reduction <add>, %13, %cst [1] : vector<8x128xf32> to vector<8xf32>
      %15 = vector.shape_cast %14 : vector<8xf32> to vector<8x1xf32>
      %c0_10 = arith.constant 0 : index
      %c0_11 = arith.constant 0 : index
      %16 = vector.load %arg3[%c0_10, %c0_11] : memref<8x1xf32, #tpu.memory_space<vmem>>, vector<8x1xf32>
      %17 = arith.mulf %15, %16 : vector<8x1xf32>
      %c0_12 = arith.constant 0 : index
      %c0_13 = arith.constant 0 : index
      %18 = vector.load %arg4[%c0_12, %c0_13] : memref<8x1xf32, #tpu.memory_space<vmem>>, vector<8x1xf32>
      tpu.vector_store %arg4[%c0_12, %c0_13], %17 {strides = array<i32>} : memref<8x1xf32, #tpu.memory_space<vmem>>, vector<8x1xf32>,
    } else {
    }
    return
  }
  func.func @transform_0(%arg0: i32, %arg1: i32) -> (i32, i32) {
    %c0_i32 = arith.constant 0 : i32
    return %arg0, %arg1 : i32, i32
  }
  func.func @transform_1(%arg0: i32, %arg1: i32) -> (i32, i32) {
    %c0_i32 = arith.constant 0 : i32
    %c0_i32_0 = arith.constant 0 : i32
    return %arg0, %c0_i32 : i32, i32
  }
  func.func @transform_2(%arg0: i32, %arg1: i32) -> (i32, i32) {
    %c0_i32 = arith.constant 0 : i32
    %c0_i32_0 = arith.constant 0 : i32
    return %arg0, %c0_i32 : i32, i32
  }
}

</mosaic_0001>

<bundles_post_ra>
// kernel: tpu_custom_call.1
= control target key start
LH: loop header
LB: loop body
LE: loop exit
PB: predicated region body
PF: predicated region fallthrough
CT: control target
= control target key end

     0   :  { %7 = vsyncpa [#allocation4], 0  ;;  %s74_s9 = smov [#allocation3]   ;;  %s108_s0 = inlined_call_operand.hbm [shape: f32[8,256], index: 0, kind: input, shape index: {}]   ;;  %s109_s1 = inlined_call_operand.vmem [shape: f32[8,1], index: 1, kind: input, shape index: {}]   ;;  %s110_s2 = inlined_call_operand.vmem [shape: f32[8,1], index: 2, kind: output, shape index: {}]  }
   0x1   :  { %s14_s10 = sshll.u32 %s74_s9, 4  ;;  %s50_s13 = scalar_lea.hbm %s108_s0, 256  ;;  %s15_s10 = int_to_ptr.vmem [resolvable:$true] %s14_s10 }
   0x2   :  { %p51_p0 = scmp.ne.s32.totalorder %s108_s0, %s50_s13  ;;  %p54_p1 = scmp.lt.u32.totalorder %s50_s13, %s108_s0 }
   0x4   :  { %p56_p2 = pnand %p54_p1, %p51_p0 }
   0x6   :  { %59 = shalt.err (!%p56_p2)
}
   0x7   :  { %s60_s18 = scalar_lea.vmem %s15_s10, 256  ;;  %p65_p4 = scmp.lt.s32.totalorder %s15_s10, %s15_s10 }
   0x8   :  { %p61_p3 = scmp.ne.s32.totalorder %s15_s10, %s60_s18  ;;  %p66_p5 = scmp.lt.s32.totalorder %s60_s18, %s60_s18 }
   0xa   :  { %p67_p6 = por %p66_p5, %p65_p4 }
   0xc   :  { %p68_p7 = pnand %p67_p6, %p61_p3 }
   0xe   :  { %71 = shalt.err (!%p68_p7)
}
   0xf   :  { %17 = dma.hbm_to_vmem [thread:$0]  %s108_s0, 256, %s15_s10, [#allocation4]  }
  0x10   :  { %72 = dma.done.wait [#allocation4], 256  }
  0x11   :  { %73 = vsyncadd [#allocation4], 4294967040  ;;  %v28_v0 = vld [vmem:[#allocation3] sm:$0xff]  ;;  %v29_v1 = vld [vmem:[#allocation3 + $0x8] sm:$0xff]  ;;  %vm42_vm0 = vcmask 7168  }
  0x12   :  { %v30_v2 = vadd.f32 %v29_v1, %v28_v0  ;;  %v40_v3 = vld [vmem:[%s109_s1] sm:$0xff] }
  0x14   :  { %38 = vadd.xlane.f32.xlu0 %v30_v2 }
  0xa1   :  { %v39_v4 = vpop.xlane.xlu0 %38 }
  0xa2   :  { %v41_v5 = vmul.f32 %v40_v3, %v39_v4 }
  0xa4   :  { %43 = vst.msk [vmem:[%s110_s2] sm:$0xff] %vm42_vm0, %v41_v5 }
  0xa5   :  { %48 = vsyncpa [#allocation4], 1 }

</bundles_post_ra>
